<compile_context>
chip_gen: v7x
topology: tpu7x:2x2x1
jax: 0.10.0
libtpu: 0.0.40
codegen_flags: <defaults>
</compile_context>

<pallas_src>
import functools
import math

import jax
import jax.numpy as jnp
from jax.experimental import pallas as pl
from jax.experimental.pallas import tpu as pltpu


def _mha_kernel(q_ref, k_ref, v_ref, mask_ref,
                wq_ref, bq_ref, wk_ref, bk_ref, wv_ref, bv_ref,
                o_ref,
                q_scr, k_scr, v_scr,
                *, head_num, head_dim, batch_tile, seq_len,
                use_bf16, approx_recip):
    # q_ref/k_ref/v_ref: (TB*S, F) blocks (bf16 on the fast path); o_ref f32.
    # mask_ref: (TB, 1, S) f32 (1 = keep).
    # w*_ref: (F, F) pre-transposed (in, out), 1/sqrt(D) folded into wq/bq.
    # q_scr/k_scr/v_scr: (TB*S, F) f32 VMEM scratch (post-ReLU projections).
    TB, S, H, D = batch_tile, seq_len, head_num, head_dim
    rows = TB * S
    F = H * D
    mxu = jnp.bfloat16 if use_bf16 else jnp.float32

    def project(x_ref, w_ref, b_ref, dst):
        # (TB*S, F) @ (F, F) on the MXU, f32 accumulation, + bias, ReLU.
        # Operands already arrive in the MXU dtype (cast done in the wrapper).
        y = jnp.dot(x_ref[...], w_ref[...],
                    preferred_element_type=jnp.float32) + b_ref[...]
        dst[...] = jnp.maximum(y, 0.0)

    project(q_ref, wq_ref, bq_ref, q_scr)
    project(k_ref, wk_ref, bk_ref, k_scr)
    project(v_ref, wv_ref, bv_ref, v_scr)

    # Hoisted mask: one broadcast + one compare per grid step, reused by all
    # heads (JAX does not CSE broadcast_in_dim).
    keep3 = jnp.broadcast_to(mask_ref[...], (TB, S, S)) >= 0.5   # (TB, S, S)

    outs = []
    for h in range(H):
        lo = h * D
        qh = q_scr[:, lo:lo + D].reshape(TB, S, D)
        kh = k_scr[:, lo:lo + D].reshape(TB, S, D)
        vh = v_scr[:, lo:lo + D].reshape(TB, S, D)

        # QK^T, batched over the batch tile.  1/sqrt(D) already folded into
        # wq/bq, so no scale multiply here.
        scores = jnp.einsum('bqd,bkd->bqk', qh.astype(mxu), kh.astype(mxu),
                            preferred_element_type=jnp.float32)   # (TB, S, S)
        scores = jnp.where(keep3, scores, -1000000000.0)

        m = jnp.max(scores, axis=-1, keepdims=True)
        p = jnp.exp(scores - m)
        denom = jnp.sum(p, axis=-1, keepdims=True)
        # approx reciprocal (EUP vrcp, ~2^-12 rel. err.) is part of the fast
        # path; the exact path uses an exact reciprocal.
        att = p * pl.reciprocal(denom, approx=approx_recip)

        outs.append(jnp.einsum('bqk,bkd->bqd', att.astype(mxu), vh.astype(mxu),
                               preferred_element_type=jnp.float32))  # (TB,S,D)

    # Assemble heads once and do a single full-width (lane-dense) store.
    y = jnp.concatenate(outs, axis=-1)                # (TB, S, F)
    o_ref[...] = y.reshape(rows, F).astype(o_ref.dtype)


def _tpu_budget():
    """(usable VMEM bytes per TensorCore, #TensorCores per chip)."""
    vmem_cap = 128 << 20
    num_tc = 1
    try:
        vmem_cap = int(pltpu.get_tpu_info().vmem_capacity_bytes)
    except Exception:
        pass
    if not vmem_cap or vmem_cap <= 0:
        vmem_cap = 128 << 20
    try:
        kind = jax.devices()[0].device_kind.lower()
    except Exception:
        kind = ""
    if "7" in kind:                      # v7x: 2 TensorCores, 64 MiB VMEM / TC
        num_tc = 2
        vmem_cap = min(vmem_cap, 64 << 20)
    # Leave headroom for compiler-internal scratch.
    return int(0.78 * vmem_cap), num_tc


def _working_set_bytes(tb, S, F, use_bf16):
    """Rough per-grid-step VMEM use: double-buffered blocks + scratch + attn temps."""
    act_item = 2 if use_bf16 else 4
    w_item = 2 if use_bf16 else 4
    Fp = -(-F // 128) * 128
    Sp = -(-S // 128) * 128
    rows = -(-(tb * S) // 8) * 8
    act_in = rows * Fp * act_item
    act_out = rows * Fp * 4
    mask = tb * 8 * Sp * 4
    w = (-(-F // 8) * 8) * Fp * w_item
    bias = 8 * Fp * 4
    pipelined = 2 * (3 * act_in + act_out + mask + 3 * (w + bias))
    scratch = 3 * rows * Fp * 4
    attn_tmp = 4 * tb * (-(-S // 8) * 8) * Sp * 4
    return pipelined + scratch + attn_tmp


def _choose_batch_tile(B, S, F, *, use_bf16, vmem_usable, num_tc,
                       target_rows=512):
    """Largest valid divisor of B whose working set fits the VMEM budget; stop
    growing once TB*S reaches target_rows (keeps a 256-wide MXU fed)."""
    valid = [d for d in range(1, B + 1)
             if B % d == 0 and (d == B or (d * S) % 8 == 0)]
    if num_tc >= 2:                       # keep >=2 grid steps for 2-TC chips
        capped = [d for d in valid if d <= B // 2]
        if capped:
            valid = capped
    best = valid[0]
    for d in valid:
        if _working_set_bytes(d, S, F, use_bf16) > vmem_usable:
            continue
        best = d
        if d * S >= target_rows:
            break
    return best


def _vmem_limit_bytes(tb, S, F, use_bf16, vmem_usable):
    est = _working_set_bytes(tb, S, F, use_bf16)
    return int(min(max(2 * est, 8 << 20), max(vmem_usable, 8 << 20)))


def multi_head_attention(q, k, v, mask, params, head_num, *,
                         use_bf16=None, approx_reciprocal=None):
    """q, k, v: (B, S, F) float32;  mask: (B, S) 0/1 (1=keep);  params: dict.

    use_bf16=None -> True (default fast path: bf16 MXU operands, f32 accum).
    approx_reciprocal=None -> follows use_bf16.
    """
    B, S, F = q.shape
    assert F % head_num == 0
    D = F // head_num

    if use_bf16 is None:
        use_bf16 = True
    if approx_reciprocal is None:
        approx_reciprocal = use_bf16

    vmem_usable, num_tc = _tpu_budget()
    TB = _choose_batch_tile(B, S, F, use_bf16=use_bf16,
                            vmem_usable=vmem_usable, num_tc=num_tc)
    grid = (B // TB,)
    rows = TB * S

    scale = 1.0 / math.sqrt(D)
    wdtype = jnp.bfloat16 if use_bf16 else jnp.float32
    adtype = jnp.bfloat16 if use_bf16 else jnp.float32

    # PyTorch Linear stores weight as (out, in); kernel wants (in, out).
    # Fold 1/sqrt(D) into the query projection (exact: ReLU is pos. homogeneous).
    wq_t = (params["wq"].T * scale).astype(wdtype)
    wk_t = params["wk"].T.astype(wdtype)
    wv_t = params["wv"].T.astype(wdtype)
    bq = (params["bq"] * scale).reshape(1, F).astype(jnp.float32)
    bk = params["bk"].reshape(1, F).astype(jnp.float32)
    bv = params["bv"].reshape(1, F).astype(jnp.float32)

    mask3 = mask.astype(jnp.float32).reshape(B, 1, S)
    q2 = q.reshape(B * S, F).astype(adtype)
    k2 = k.reshape(B * S, F).astype(adtype)
    v2 = v.reshape(B * S, F).astype(adtype)

    kernel = functools.partial(
        _mha_kernel, head_num=head_num, head_dim=D,
        batch_tile=TB, seq_len=S, use_bf16=use_bf16,
        approx_recip=approx_reciprocal)

    act_spec = pl.BlockSpec((rows, F), lambda i: (i, 0))
    mask_spec = pl.BlockSpec((TB, 1, S), lambda i: (i, 0, 0))
    w_spec = pl.BlockSpec((F, F), lambda i: (0, 0))
    b_spec = pl.BlockSpec((1, F), lambda i: (0, 0))

    out2 = pl.pallas_call(
        kernel,
        out_shape=jax.ShapeDtypeStruct((B * S, F), q.dtype),
        grid=grid,
        in_specs=[act_spec, act_spec, act_spec, mask_spec,
                  w_spec, b_spec, w_spec, b_spec, w_spec, b_spec],
        out_specs=act_spec,
        scratch_shapes=[pltpu.VMEM((rows, F), jnp.float32)] * 3,
        compiler_params=pltpu.CompilerParams(
            dimension_semantics=("parallel",),
            vmem_limit_bytes=_vmem_limit_bytes(TB, S, F, use_bf16, vmem_usable)),
    )(q2, k2, v2, mask3, wq_t, bq, wk_t, bk, wv_t, bv)

    return out2.reshape(B, S, F)


def _reference(q, k, v, mask, params, head_num):
    """Pure-JAX reference matching the PyTorch forward (eval mode)."""
    B, S, F = q.shape
    D = F // head_num

    def lin(x, w, b):
        return jnp.maximum(x @ w.T + b, 0.0)

    qh = lin(q, params["wq"], params["bq"])
    kh = lin(k, params["wk"], params["bk"])
    vh = lin(v, params["wv"], params["bv"])

    def to_batches(x):
        return x.reshape(B, S, head_num, D).transpose(0, 2, 1, 3).reshape(B * head_num, S, D)

    qb, kb, vb = to_batches(qh), to_batches(kh), to_batches(vh)
    maskb = jnp.repeat(mask[:, None, :], head_num, axis=1).reshape(B * head_num, 1, S)

    scores = jnp.einsum("bqd,bkd->bqk", qb, kb) / math.sqrt(D)
    scores = jnp.where(maskb < 0.5, -1000000000.0, scores)
    att = jax.nn.softmax(scores, axis=-1)
    y = jnp.einsum("bqk,bkd->bqd", att, vb)
    return y.reshape(B, head_num, S, D).transpose(0, 2, 1, 3).reshape(B, S, F)


if __name__ == "__main__":
    B, S, F, H = 2, 8, 32, 4

    key = jax.random.PRNGKey(0)
    ks = jax.random.split(key, 10)

    q = jax.random.normal(ks[0], (B, S, F), dtype=jnp.float32)
    k = jax.random.normal(ks[1], (B, S, F), dtype=jnp.float32)
    v = jax.random.normal(ks[2], (B, S, F), dtype=jnp.float32)

    # mask: 1 = keep, 0 = masked-out key positions (last two keys of batch 1 masked)
    mask = jnp.ones((B, S), dtype=jnp.float32)
    mask = mask.at[1, -2:].set(0.0)

    bound = 1.0 / math.sqrt(F)
    params = {
        "wq": jax.random.uniform(ks[3], (F, F), minval=-bound, maxval=bound, dtype=jnp.float32),
        "wk": jax.random.uniform(ks[4], (F, F), minval=-bound, maxval=bound, dtype=jnp.float32),
        "wv": jax.random.uniform(ks[5], (F, F), minval=-bound, maxval=bound, dtype=jnp.float32),
        "bq": jax.random.uniform(ks[6], (F,), minval=-bound, maxval=bound, dtype=jnp.float32),
        "bk": jax.random.uniform(ks[7], (F,), minval=-bound, maxval=bound, dtype=jnp.float32),
        "bv": jax.random.uniform(ks[8], (F,), minval=-bound, maxval=bound, dtype=jnp.float32),
    }

    ref = _reference(q, k, v, mask, params, H)

    # Exact (f32 MXU, exact reciprocal) path: must match the reference tightly.
    out = multi_head_attention(q, k, v, mask, params, H, use_bf16=False)
    out = jax.block_until_ready(out)
    assert out.shape == (B, S, F)
    assert jnp.allclose(out, ref, rtol=1e-5, atol=1e-5), "Pallas f32 kernel mismatch vs reference"

    # Default fast path (bf16 MXU operands, f32 accumulation, approx reciprocal).
    out_fast = multi_head_attention(q, k, v, mask, params, H)
    out_fast = jax.block_until_ready(out_fast)
    assert jnp.allclose(out_fast, ref, rtol=5e-2, atol=5e-2), "Pallas bf16 kernel mismatch vs reference"

    print("KERNEL_OK")
</pallas_src>

<mosaic_0001>
module attributes {stable_mosaic.version = 11 : i64} {
  func.func @_mha_kernel(%arg0: i32, %arg1: memref<16x32xf32, #tpu.memory_space<vmem>>, %arg2: memref<16x32xf32, #tpu.memory_space<vmem>>, %arg3: memref<16x32xf32, #tpu.memory_space<vmem>>, %arg4: memref<2x1x8xf32, #tpu.memory_space<vmem>>, %arg5: memref<32x32xf32, #tpu.memory_space<vmem>>, %arg6: memref<1x32xf32, #tpu.memory_space<vmem>>, %arg7: memref<32x32xf32, #tpu.memory_space<vmem>>, %arg8: memref<1x32xf32, #tpu.memory_space<vmem>>, %arg9: memref<32x32xf32, #tpu.memory_space<vmem>>, %arg10: memref<1x32xf32, #tpu.memory_space<vmem>>, %arg11: memref<16x32xf32, #tpu.memory_space<vmem>>, %arg12: memref<16x32xf32, #tpu.memory_space<vmem>>, %arg13: memref<16x32xf32, #tpu.memory_space<vmem>>, %arg14: memref<16x32xf32, #tpu.memory_space<vmem>>) attributes {dimension_semantics = [#tpu.dimension_semantics<parallel>], iteration_bounds = array<i64: 1>, scalar_prefetch = 0 : i64, scratch_operands = 3 : i64, tpu.core_type = #tpu.core_type<tc>, window_params = [{transform_indices = @transform_0, window_bounds = array<i64: 16, 32>}, {transform_indices = @transform_1, window_bounds = array<i64: 16, 32>}, {transform_indices = @transform_2, window_bounds = array<i64: 16, 32>}, {transform_indices = @transform_3, window_bounds = array<i64: 2, 1, 8>}, {pipeline_mode = #tpu.pipeline_mode<synchronous>, transform_indices = @transform_4, window_bounds = array<i64: 32, 32>}, {pipeline_mode = #tpu.pipeline_mode<synchronous>, transform_indices = @transform_5, window_bounds = array<i64: 1, 32>}, {pipeline_mode = #tpu.pipeline_mode<synchronous>, transform_indices = @transform_6, window_bounds = array<i64: 32, 32>}, {pipeline_mode = #tpu.pipeline_mode<synchronous>, transform_indices = @transform_7, window_bounds = array<i64: 1, 32>}, {pipeline_mode = #tpu.pipeline_mode<synchronous>, transform_indices = @transform_8, window_bounds = array<i64: 32, 32>}, {pipeline_mode = #tpu.pipeline_mode<synchronous>, transform_indices = @transform_9, window_bounds = array<i64: 1, 32>}, {transform_indices = @transform_10, window_bounds = array<i64: 16, 32>}]} {
    %c0 = arith.constant 0 : index
    %c0_0 = arith.constant 0 : index
    %0 = vector.load %arg1[%c0, %c0_0] : memref<16x32xf32, #tpu.memory_space<vmem>>, vector<16x32xf32>
    %c0_1 = arith.constant 0 : index
    %c0_2 = arith.constant 0 : index
    %1 = vector.load %arg5[%c0_1, %c0_2] : memref<32x32xf32, #tpu.memory_space<vmem>>, vector<32x32xf32>
    %cst = arith.constant dense<0.000000e+00> : vector<16x32xf32>
    %2 = tpu.matmul %0, %1, %cst {dimension_numbers = #tpu.dot_dimension_numbers<[1], [0], [0], [1], [0, 0, 1, 1], [], []>} : vector<16x32xf32>, vector<32x32xf32>, vector<16x32xf32> -> vector<16x32xf32>
    %c0_3 = arith.constant 0 : index
    %c0_4 = arith.constant 0 : index
    %3 = vector.load %arg6[%c0_3, %c0_4] : memref<1x32xf32, #tpu.memory_space<vmem>>, vector<1x32xf32>
    %4 = vector.broadcast %3 : vector<1x32xf32> to vector<16x32xf32>
    %5 = arith.addf %2, %4 : vector<16x32xf32>
    %cst_5 = arith.constant 0.000000e+00 : f32
    %6 = vector.broadcast %cst_5 : f32 to vector<16x32xf32>
    %7 = arith.maximumf %5, %6 : vector<16x32xf32>
    %c0_6 = arith.constant 0 : index
    %c0_7 = arith.constant 0 : index
    %8 = vector.load %arg12[%c0_6, %c0_7] : memref<16x32xf32, #tpu.memory_space<vmem>>, vector<16x32xf32>
    tpu.vector_store %arg12[%c0_6, %c0_7], %7 {strides = array<i32>} : memref<16x32xf32, #tpu.memory_space<vmem>>, vector<16x32xf32>,
    %c0_8 = arith.constant 0 : index
    %c0_9 = arith.constant 0 : index
    %9 = vector.load %arg2[%c0_8, %c0_9] : memref<16x32xf32, #tpu.memory_space<vmem>>, vector<16x32xf32>
    %c0_10 = arith.constant 0 : index
    %c0_11 = arith.constant 0 : index
    %10 = vector.load %arg7[%c0_10, %c0_11] : memref<32x32xf32, #tpu.memory_space<vmem>>, vector<32x32xf32>
    %cst_12 = arith.constant dense<0.000000e+00> : vector<16x32xf32>
    %11 = tpu.matmul %9, %10, %cst_12 {dimension_numbers = #tpu.dot_dimension_numbers<[1], [0], [0], [1], [0, 0, 1, 1], [], []>} : vector<16x32xf32>, vector<32x32xf32>, vector<16x32xf32> -> vector<16x32xf32>
    %c0_13 = arith.constant 0 : index
    %c0_14 = arith.constant 0 : index
    %12 = vector.load %arg8[%c0_13, %c0_14] : memref<1x32xf32, #tpu.memory_space<vmem>>, vector<1x32xf32>
    %13 = vector.broadcast %12 : vector<1x32xf32> to vector<16x32xf32>
    %14 = arith.addf %11, %13 : vector<16x32xf32>
    %cst_15 = arith.constant 0.000000e+00 : f32
    %15 = vector.broadcast %cst_15 : f32 to vector<16x32xf32>
    %16 = arith.maximumf %14, %15 : vector<16x32xf32>
    %c0_16 = arith.constant 0 : index
    %c0_17 = arith.constant 0 : index
    %17 = vector.load %arg13[%c0_16, %c0_17] : memref<16x32xf32, #tpu.memory_space<vmem>>, vector<16x32xf32>
    tpu.vector_store %arg13[%c0_16, %c0_17], %16 {strides = array<i32>} : memref<16x32xf32, #tpu.memory_space<vmem>>, vector<16x32xf32>,
    %c0_18 = arith.constant 0 : index
    %c0_19 = arith.constant 0 : index
    %18 = vector.load %arg3[%c0_18, %c0_19] : memref<16x32xf32, #tpu.memory_space<vmem>>, vector<16x32xf32>
    %c0_20 = arith.constant 0 : index
    %c0_21 = arith.constant 0 : index
    %19 = vector.load %arg9[%c0_20, %c0_21] : memref<32x32xf32, #tpu.memory_space<vmem>>, vector<32x32xf32>
    %cst_22 = arith.constant dense<0.000000e+00> : vector<16x32xf32>
    %20 = tpu.matmul %18, %19, %cst_22 {dimension_numbers = #tpu.dot_dimension_numbers<[1], [0], [0], [1], [0, 0, 1, 1], [], []>} : vector<16x32xf32>, vector<32x32xf32>, vector<16x32xf32> -> vector<16x32xf32>
    %c0_23 = arith.constant 0 : index
    %c0_24 = arith.constant 0 : index
    %21 = vector.load %arg10[%c0_23, %c0_24] : memref<1x32xf32, #tpu.memory_space<vmem>>, vector<1x32xf32>
    %22 = vector.broadcast %21 : vector<1x32xf32> to vector<16x32xf32>
    %23 = arith.addf %20, %22 : vector<16x32xf32>
    %cst_25 = arith.constant 0.000000e+00 : f32
    %24 = vector.broadcast %cst_25 : f32 to vector<16x32xf32>
    %25 = arith.maximumf %23, %24 : vector<16x32xf32>
    %c0_26 = arith.constant 0 : index
    %c0_27 = arith.constant 0 : index
    %26 = vector.load %arg14[%c0_26, %c0_27] : memref<16x32xf32, #tpu.memory_space<vmem>>, vector<16x32xf32>
    tpu.vector_store %arg14[%c0_26, %c0_27], %25 {strides = array<i32>} : memref<16x32xf32, #tpu.memory_space<vmem>>, vector<16x32xf32>,
    %c0_28 = arith.constant 0 : index
    %c0_29 = arith.constant 0 : index
    %c0_30 = arith.constant 0 : index
    %27 = vector.load %arg4[%c0_28, %c0_29, %c0_30] : memref<2x1x8xf32, #tpu.memory_space<vmem>>, vector<2x1x8xf32>
    %28 = vector.shape_cast %27 : vector<2x1x8xf32> to vector<2x1x8xf32>
    %29 = vector.broadcast %28 : vector<2x1x8xf32> to vector<2x8x8xf32>
    %cst_31 = arith.constant 5.000000e-01 : f32
    %30 = vector.broadcast %cst_31 : f32 to vector<2x8x8xf32>
    %31 = arith.cmpf oge, %29, %30 : vector<2x8x8xf32>
    %c0_32 = arith.constant 0 : index
    %c0_33 = arith.constant 0 : index
    %32 = vector.load %arg12[%c0_32, %c0_33] : memref<16x32xf32, #tpu.memory_space<vmem>>, vector<16x8xf32>
    %33 = vector.shape_cast %32 : vector<16x8xf32> to vector<2x8x8xf32>
    %c0_34 = arith.constant 0 : index
    %c0_35 = arith.constant 0 : index
    %34 = vector.load %arg13[%c0_34, %c0_35] : memref<16x32xf32, #tpu.memory_space<vmem>>, vector<16x8xf32>
    %35 = vector.shape_cast %34 : vector<16x8xf32> to vector<2x8x8xf32>
    %c0_36 = arith.constant 0 : index
    %c0_37 = arith.constant 0 : index
    %36 = vector.load %arg14[%c0_36, %c0_37] : memref<16x32xf32, #tpu.memory_space<vmem>>, vector<16x8xf32>
    %37 = vector.shape_cast %36 : vector<16x8xf32> to vector<2x8x8xf32>
    "tpu.trace_start"() <{level = 10 : i32, message = "bqd,bkd->bqk"}> : () -> ()
    %cst_38 = arith.constant dense<0.000000e+00> : vector<2x8x8xf32>
    %38 = tpu.matmul %33, %35, %cst_38 {dimension_numbers = #tpu.dot_dimension_numbers<[2], [2], [1], [1], [0, 0, 0, 1, 1, 1], [0], [0]>} : vector<2x8x8xf32>, vector<2x8x8xf32>, vector<2x8x8xf32> -> vector<2x8x8xf32>
    %cst_39 = arith.constant -1.000000e+09 : f32
    "tpu.trace_stop"() : () -> ()
    %39 = vector.broadcast %cst_39 : f32 to vector<2x8x8xf32>
    %40 = arith.select %31, %38, %39 : vector<2x8x8xi1>, vector<2x8x8xf32>
    %cst_40 = arith.constant dense<0xFF800000> : vector<2x8xf32>
    %41 = vector.multi_reduction <maximumf>, %40, %cst_40 [2] : vector<2x8x8xf32> to vector<2x8xf32>
    %42 = vector.shape_cast %41 : vector<2x8xf32> to vector<2x8x1xf32>
    %43 = vector.broadcast %42 : vector<2x8x1xf32> to vector<2x8x8xf32>
    %44 = arith.subf %40, %43 : vector<2x8x8xf32>
    %45 = math.exp %44 : vector<2x8x8xf32>
    %cst_41 = arith.constant dense<0.000000e+00> : vector<2x8xf32>
    %46 = vector.multi_reduction <add>, %45, %cst_41 [2] : vector<2x8x8xf32> to vector<2x8xf32>
    %47 = vector.shape_cast %46 : vector<2x8xf32> to vector<2x8x1xf32>
    %48 = tpu.reciprocal %47 : vector<2x8x1xf32> -> vector<2x8x1xf32>
    %49 = vector.broadcast %48 : vector<2x8x1xf32> to vector<2x8x8xf32>
    %50 = arith.mulf %45, %49 : vector<2x8x8xf32>
    "tpu.trace_start"() <{level = 10 : i32, message = "bqk,bkd->bqd"}> : () -> ()
    %cst_42 = arith.constant dense<0.000000e+00> : vector<2x8x8xf32>
    %51 = tpu.matmul %50, %37, %cst_42 {dimension_numbers = #tpu.dot_dimension_numbers<[2], [1], [1], [2], [0, 0, 0, 1, 1, 2], [0], [0]>} : vector<2x8x8xf32>, vector<2x8x8xf32>, vector<2x8x8xf32> -> vector<2x8x8xf32>
    "tpu.trace_stop"() : () -> ()
    %c0_43 = arith.constant 0 : index
    %c8 = arith.constant 8 : index
    %52 = vector.load %arg12[%c0_43, %c8] : memref<16x32xf32, #tpu.memory_space<vmem>>, vector<16x8xf32>
    %53 = vector.shape_cast %52 : vector<16x8xf32> to vector<2x8x8xf32>
    %c0_44 = arith.constant 0 : index
    %c8_45 = arith.constant 8 : index
    %54 = vector.load %arg13[%c0_44, %c8_45] : memref<16x32xf32, #tpu.memory_space<vmem>>, vector<16x8xf32>
    %55 = vector.shape_cast %54 : vector<16x8xf32> to vector<2x8x8xf32>
    %c0_46 = arith.constant 0 : index
    %c8_47 = arith.constant 8 : index
    %56 = vector.load %arg14[%c0_46, %c8_47] : memref<16x32xf32, #tpu.memory_space<vmem>>, vector<16x8xf32>
    %57 = vector.shape_cast %56 : vector<16x8xf32> to vector<2x8x8xf32>
    "tpu.trace_start"() <{level = 10 : i32, message = "bqd,bkd->bqk"}> : () -> ()
    %cst_48 = arith.constant dense<0.000000e+00> : vector<2x8x8xf32>
    %58 = tpu.matmul %53, %55, %cst_48 {dimension_numbers = #tpu.dot_dimension_numbers<[2], [2], [1], [1], [0, 0, 0, 1, 1, 1], [0], [0]>} : vector<2x8x8xf32>, vector<2x8x8xf32>, vector<2x8x8xf32> -> vector<2x8x8xf32>
    %cst_49 = arith.constant -1.000000e+09 : f32
    "tpu.trace_stop"() : () -> ()
    %59 = vector.broadcast %cst_49 : f32 to vector<2x8x8xf32>
    %60 = arith.select %31, %58, %59 : vector<2x8x8xi1>, vector<2x8x8xf32>
    %cst_50 = arith.constant dense<0xFF800000> : vector<2x8xf32>
    %61 = vector.multi_reduction <maximumf>, %60, %cst_50 [2] : vector<2x8x8xf32> to vector<2x8xf32>
    %62 = vector.shape_cast %61 : vector<2x8xf32> to vector<2x8x1xf32>
    %63 = vector.broadcast %62 : vector<2x8x1xf32> to vector<2x8x8xf32>
    %64 = arith.subf %60, %63 : vector<2x8x8xf32>
    %65 = math.exp %64 : vector<2x8x8xf32>
    %cst_51 = arith.constant dense<0.000000e+00> : vector<2x8xf32>
    %66 = vector.multi_reduction <add>, %65, %cst_51 [2] : vector<2x8x8xf32> to vector<2x8xf32>
    %67 = vector.shape_cast %66 : vector<2x8xf32> to vector<2x8x1xf32>
    %68 = tpu.reciprocal %67 : vector<2x8x1xf32> -> vector<2x8x1xf32>
    %69 = vector.broadcast %68 : vector<2x8x1xf32> to vector<2x8x8xf32>
    %70 = arith.mulf %65, %69 : vector<2x8x8xf32>
    "tpu.trace_start"() <{level = 10 : i32, message = "bqk,bkd->bqd"}> : () -> ()
    %cst_52 = arith.constant dense<0.000000e+00> : vector<2x8x8xf32>
    %71 = tpu.matmul %70, %57, %cst_52 {dimension_numbers = #tpu.dot_dimension_numbers<[2], [1], [1], [2], [0, 0, 0, 1, 1, 2], [0], [0]>} : vector<2x8x8xf32>, vector<2x8x8xf32>, vector<2x8x8xf32> -> vector<2x8x8xf32>
    "tpu.trace_stop"() : () -> ()
    %c0_53 = arith.constant 0 : index
    %c16 = arith.constant 16 : index
    %72 = vector.load %arg12[%c0_53, %c16] : memref<16x32xf32, #tpu.memory_space<vmem>>, vector<16x8xf32>
    %73 = vector.shape_cast %72 : vector<16x8xf32> to vector<2x8x8xf32>
    %c0_54 = arith.constant 0 : index
    %c16_55 = arith.constant 16 : index
    %74 = vector.load %arg13[%c0_54, %c16_55] : memref<16x32xf32, #tpu.memory_space<vmem>>, vector<16x8xf32>
    %75 = vector.shape_cast %74 : vector<16x8xf32> to vector<2x8x8xf32>
    %c0_56 = arith.constant 0 : index
    %c16_57 = arith.constant 16 : index
    %76 = vector.load %arg14[%c0_56, %c16_57] : memref<16x32xf32, #tpu.memory_space<vmem>>, vector<16x8xf32>
    %77 = vector.shape_cast %76 : vector<16x8xf32> to vector<2x8x8xf32>
    "tpu.trace_start"() <{level = 10 : i32, message = "bqd,bkd->bqk"}> : () -> ()
    %cst_58 = arith.constant dense<0.000000e+00> : vector<2x8x8xf32>
    %78 = tpu.matmul %73, %75, %cst_58 {dimension_numbers = #tpu.dot_dimension_numbers<[2], [2], [1], [1], [0, 0, 0, 1, 1, 1], [0], [0]>} : vector<2x8x8xf32>, vector<2x8x8xf32>, vector<2x8x8xf32> -> vector<2x8x8xf32>
    %cst_59 = arith.constant -1.000000e+09 : f32
    "tpu.trace_stop"() : () -> ()
    %79 = vector.broadcast %cst_59 : f32 to vector<2x8x8xf32>
    %80 = arith.select %31, %78, %79 : vector<2x8x8xi1>, vector<2x8x8xf32>
    %cst_60 = arith.constant dense<0xFF800000> : vector<2x8xf32>
    %81 = vector.multi_reduction <maximumf>, %80, %cst_60 [2] : vector<2x8x8xf32> to vector<2x8xf32>
    %82 = vector.shape_cast %81 : vector<2x8xf32> to vector<2x8x1xf32>
    %83 = vector.broadcast %82 : vector<2x8x1xf32> to vector<2x8x8xf32>
    %84 = arith.subf %80, %83 : vector<2x8x8xf32>
    %85 = math.exp %84 : vector<2x8x8xf32>
    %cst_61 = arith.constant dense<0.000000e+00> : vector<2x8xf32>
    %86 = vector.multi_reduction <add>, %85, %cst_61 [2] : vector<2x8x8xf32> to vector<2x8xf32>
    %87 = vector.shape_cast %86 : vector<2x8xf32> to vector<2x8x1xf32>
    %88 = tpu.reciprocal %87 : vector<2x8x1xf32> -> vector<2x8x1xf32>
    %89 = vector.broadcast %88 : vector<2x8x1xf32> to vector<2x8x8xf32>
    %90 = arith.mulf %85, %89 : vector<2x8x8xf32>
    "tpu.trace_start"() <{level = 10 : i32, message = "bqk,bkd->bqd"}> : () -> ()
    %cst_62 = arith.constant dense<0.000000e+00> : vector<2x8x8xf32>
    %91 = tpu.matmul %90, %77, %cst_62 {dimension_numbers = #tpu.dot_dimension_numbers<[2], [1], [1], [2], [0, 0, 0, 1, 1, 2], [0], [0]>} : vector<2x8x8xf32>, vector<2x8x8xf32>, vector<2x8x8xf32> -> vector<2x8x8xf32>
    "tpu.trace_stop"() : () -> ()
    %c0_63 = arith.constant 0 : index
    %c24 = arith.constant 24 : index
    %92 = vector.load %arg12[%c0_63, %c24] : memref<16x32xf32, #tpu.memory_space<vmem>>, vector<16x8xf32>
    %93 = vector.shape_cast %92 : vector<16x8xf32> to vector<2x8x8xf32>
    %c0_64 = arith.constant 0 : index
    %c24_65 = arith.constant 24 : index
    %94 = vector.load %arg13[%c0_64, %c24_65] : memref<16x32xf32, #tpu.memory_space<vmem>>, vector<16x8xf32>
    %95 = vector.shape_cast %94 : vector<16x8xf32> to vector<2x8x8xf32>
    %c0_66 = arith.constant 0 : index
    %c24_67 = arith.constant 24 : index
    %96 = vector.load %arg14[%c0_66, %c24_67] : memref<16x32xf32, #tpu.memory_space<vmem>>, vector<16x8xf32>
    %97 = vector.shape_cast %96 : vector<16x8xf32> to vector<2x8x8xf32>
    "tpu.trace_start"() <{level = 10 : i32, message = "bqd,bkd->bqk"}> : () -> ()
    %cst_68 = arith.constant dense<0.000000e+00> : vector<2x8x8xf32>
    %98 = tpu.matmul %93, %95, %cst_68 {dimension_numbers = #tpu.dot_dimension_numbers<[2], [2], [1], [1], [0, 0, 0, 1, 1, 1], [0], [0]>} : vector<2x8x8xf32>, vector<2x8x8xf32>, vector<2x8x8xf32> -> vector<2x8x8xf32>
    %cst_69 = arith.constant -1.000000e+09 : f32
    "tpu.trace_stop"() : () -> ()
    %99 = vector.broadcast %cst_69 : f32 to vector<2x8x8xf32>
    %100 = arith.select %31, %98, %99 : vector<2x8x8xi1>, vector<2x8x8xf32>
    %cst_70 = arith.constant dense<0xFF800000> : vector<2x8xf32>
    %101 = vector.multi_reduction <maximumf>, %100, %cst_70 [2] : vector<2x8x8xf32> to vector<2x8xf32>
    %102 = vector.shape_cast %101 : vector<2x8xf32> to vector<2x8x1xf32>
    %103 = vector.broadcast %102 : vector<2x8x1xf32> to vector<2x8x8xf32>
    %104 = arith.subf %100, %103 : vector<2x8x8xf32>
    %105 = math.exp %104 : vector<2x8x8xf32>
    %cst_71 = arith.constant dense<0.000000e+00> : vector<2x8xf32>
    %106 = vector.multi_reduction <add>, %105, %cst_71 [2] : vector<2x8x8xf32> to vector<2x8xf32>
    %107 = vector.shape_cast %106 : vector<2x8xf32> to vector<2x8x1xf32>
    %108 = tpu.reciprocal %107 : vector<2x8x1xf32> -> vector<2x8x1xf32>
    %109 = vector.broadcast %108 : vector<2x8x1xf32> to vector<2x8x8xf32>
    %110 = arith.mulf %105, %109 : vector<2x8x8xf32>
    "tpu.trace_start"() <{level = 10 : i32, message = "bqk,bkd->bqd"}> : () -> ()
    %cst_72 = arith.constant dense<0.000000e+00> : vector<2x8x8xf32>
    %111 = tpu.matmul %110, %97, %cst_72 {dimension_numbers = #tpu.dot_dimension_numbers<[2], [1], [1], [2], [0, 0, 0, 1, 1, 2], [0], [0]>} : vector<2x8x8xf32>, vector<2x8x8xf32>, vector<2x8x8xf32> -> vector<2x8x8xf32>
    "tpu.trace_stop"() : () -> ()
    %112 = tpu.concatenate %51, %71, %91, %111 in 2 : vector<2x8x8xf32>, vector<2x8x8xf32>, vector<2x8x8xf32>, vector<2x8x8xf32> -> vector<2x8x32xf32>
    %113 = vector.shape_cast %112 : vector<2x8x32xf32> to vector<16x32xf32>
    %c0_73 = arith.constant 0 : index
    %c0_74 = arith.constant 0 : index
    %114 = vector.load %arg11[%c0_73, %c0_74] : memref<16x32xf32, #tpu.memory_space<vmem>>, vector<16x32xf32>
    tpu.vector_store %arg11[%c0_73, %c0_74], %113 {strides = array<i32>} : memref<16x32xf32, #tpu.memory_space<vmem>>, vector<16x32xf32>,
    return
  }
  func.func @transform_0(%arg0: i32) -> (i32, i32) {
    %c0_i32 = arith.constant 0 : i32
    %c0_i32_0 = arith.constant 0 : i32
    return %arg0, %c0_i32 : i32, i32
  }
  func.func @transform_1(%arg0: i32) -> (i32, i32) {
    %c0_i32 = arith.constant 0 : i32
    %c0_i32_0 = arith.constant 0 : i32
    return %arg0, %c0_i32 : i32, i32
  }
  func.func @transform_2(%arg0: i32) -> (i32, i32) {
    %c0_i32 = arith.constant 0 : i32
    %c0_i32_0 = arith.constant 0 : i32
    return %arg0, %c0_i32 : i32, i32
  }
  func.func @transform_3(%arg0: i32) -> (i32, i32, i32) {
    %c0_i32 = arith.constant 0 : i32
    %c0_i32_0 = arith.constant 0 : i32
    %c0_i32_1 = arith.constant 0 : i32
    return %arg0, %c0_i32, %c0_i32_0 : i32, i32, i32
  }
  func.func @transform_4(%arg0: i32) -> (i32, i32) {
    %c0_i32 = arith.constant 0 : i32
    %c0_i32_0 = arith.constant 0 : i32
    %c0_i32_1 = arith.constant 0 : i32
    return %c0_i32, %c0_i32_0 : i32, i32
  }
  func.func @transform_5(%arg0: i32) -> (i32, i32) {
    %c0_i32 = arith.constant 0 : i32
    %c0_i32_0 = arith.constant 0 : i32
    %c0_i32_1 = arith.constant 0 : i32
    return %c0_i32, %c0_i32_0 : i32, i32
  }
  func.func @transform_6(%arg0: i32) -> (i32, i32) {
    %c0_i32 = arith.constant 0 : i32
    %c0_i32_0 = arith.constant 0 : i32
    %c0_i32_1 = arith.constant 0 : i32
    return %c0_i32, %c0_i32_0 : i32, i32
  }
  func.func @transform_7(%arg0: i32) -> (i32, i32) {
    %c0_i32 = arith.constant 0 : i32
    %c0_i32_0 = arith.constant 0 : i32
    %c0_i32_1 = arith.constant 0 : i32
    return %c0_i32, %c0_i32_0 : i32, i32
  }
  func.func @transform_8(%arg0: i32) -> (i32, i32) {
    %c0_i32 = arith.constant 0 : i32
    %c0_i32_0 = arith.constant 0 : i32
    %c0_i32_1 = arith.constant 0 : i32
    return %c0_i32, %c0_i32_0 : i32, i32
  }
  func.func @transform_9(%arg0: i32) -> (i32, i32) {
    %c0_i32 = arith.constant 0 : i32
    %c0_i32_0 = arith.constant 0 : i32
    %c0_i32_1 = arith.constant 0 : i32
    return %c0_i32, %c0_i32_0 : i32, i32
  }
  func.func @transform_10(%arg0: i32) -> (i32, i32) {
    %c0_i32 = arith.constant 0 : i32
    %c0_i32_0 = arith.constant 0 : i32
    return %arg0, %c0_i32 : i32, i32
  }
}

</mosaic_0001>

<bundles_post_ra>
// kernel: tpu_custom_call.1
= control target key start
LH: loop header
LB: loop body
LE: loop exit
PB: predicated region body
PF: predicated region fallthrough
CT: control target
= control target key end

     0   :  { %15 = vsyncpa [#allocation6], 0  ;;  %s2684_s0 = inlined_call_operand.hbm [shape: f32[16,32], index: 0, kind: input, shape index: {}]   ;;  %s2685_s1 = inlined_call_operand.hbm [shape: f32[16,32], index: 1, kind: input, shape index: {}]   ;;  %s2686_s2 = inlined_call_operand.hbm [shape: f32[16,32], index: 2, kind: input, shape index: {}]   ;;  %s2687_s3 = inlined_call_operand.vmem [shape: f32[2,1,8], index: 3, kind: input, shape index: {}]   ;;  %s2688_s4 = inlined_call_operand.hbm [shape: f32[32,32], index: 4, kind: input, shape index: {}]   ;;  %s2689_s5 = inlined_call_operand.vmem [shape: f32[1,32], index: 5, kind: input, shape index: {}]   ;;  %s2690_s6 = inlined_call_operand.hbm [shape: f32[32,32], index: 6, kind: input, shape index: {}]   ;;  %s2691_s7 = inlined_call_operand.vmem [shape: f32[1,32], index: 7, kind: input, shape index: {}]   ;;  %s2692_s8 = inlined_call_operand.hbm [shape: f32[32,32], index: 8, kind: input, shape index: {}]   ;;  %s2693_s9 = inlined_call_operand.vmem [shape: f32[1,32], index: 9, kind: input, shape index: {}]   ;;  %s2694_s10 = inlined_call_operand.hbm [shape: f32[16,32], index: 10, kind: output, shape index: {}]  }
   0x1   :  { %16 = vsyncpa [#allocation9], 0 }
   0x2   :  { %17 = vsyncpa [#allocation12], 0 }
   0x3   :  { %18 = vsyncpa [#allocation15], 0 }
   0x4   :  { %19 = vsyncpa [#allocation7], 0  ;;  %s2278_s13 = smov [#allocation8]   ;;  %s2279_s15 = smov [#allocation11]  }
   0x5   :  { %s37_s14 = sshll.u32 %s2278_s13, 4  ;;  %s63_s16 = sshll.u32 %s2279_s15, 4  ;;  %s38_s14 = int_to_ptr.vmem [resolvable:$true] %s37_s14  ;;  %s2349_s16 = int_to_ptr.vmem [resolvable:$true] %s63_s16 }
   0x6   :  { %s2114_s19 = scalar_lea.hbm %s2685_s1, 256 }
   0x7   :  { %p2115_p0 = scmp.ne.s32.totalorder %s2685_s1, %s2114_s19  ;;  %p2118_p1 = scmp.lt.u32.totalorder %s2114_s19, %s2685_s1 }
   0x9   :  { %p2120_p2 = pnand %p2118_p1, %p2115_p0 }
   0xb   :  { %2123 = shalt.err (!%p2120_p2)
}
   0xc   :  { %s2124_s24 = scalar_lea.vmem %s38_s14, 256  ;;  %p2129_p4 = scmp.lt.s32.totalorder %s38_s14, %s38_s14 }
   0xd   :  { %p2125_p3 = scmp.ne.s32.totalorder %s38_s14, %s2124_s24  ;;  %p2130_p5 = scmp.lt.s32.totalorder %s2124_s24, %s2124_s24 }
   0xf   :  { %p2131_p6 = por %p2130_p5, %p2129_p4 }
  0x11   :  { %p2132_p7 = pnand %p2131_p6, %p2125_p3 }
  0x13   :  { %2135 = shalt.err (!%p2132_p7)
}
  0x14   :  { %s2280_s25 = smov 128   ;;  %s2281_s26 = smov 8  }
  0x15   :  { %43 = dma.hbm_to_vmem [thread:$0]  %s2685_s1, 256, %s38_s14, [#allocation9], %s2280_s25, %s2280_s25, %s2281_s26  }
  0x16   :  { %s2136_s11 = scalar_lea.hbm %s2688_s4, 512 }
  0x17   :  { %p2137_p8 = scmp.ne.s32.totalorder %s2688_s4, %s2136_s11  ;;  %p2140_p9 = scmp.lt.u32.totalorder %s2136_s11, %s2688_s4 }
  0x19   :  { %p2142_p10 = pnand %p2140_p9, %p2137_p8 }
  0x1b   :  { %2145 = shalt.err (!%p2142_p10)
}
  0x1c   :  { %s2146_s18 = scalar_lea.vmem %s2349_s16, 512  ;;  %p2151_p12 = scmp.lt.s32.totalorder %s2349_s16, %s2349_s16 }
  0x1d   :  { %p2147_p11 = scmp.ne.s32.totalorder %s2349_s16, %s2146_s18  ;;  %p2152_p13 = scmp.lt.s32.totalorder %s2146_s18, %s2146_s18 }
  0x1f   :  { %p2153_p0 = por %p2152_p13, %p2151_p12 }
  0x21   :  { %p2154_p1 = pnand %p2153_p0, %p2147_p11 }
  0x23   :  { %2157 = shalt.err (!%p2154_p1)
}
  0x24   :  { %69 = dma.hbm_to_vmem [thread:$0]  %s2688_s4, 512, %s2349_s16, [#allocation12], %s2280_s25, %s2280_s25, %s2281_s26  }
  0x25   :  { %s2282_s19 = smov [#allocation5]   ;;  %s2283_s21 = smov [#allocation10]  }
  0x26   :  { %s25_s20 = sshll.u32 %s2282_s19, 4  ;;  %s49_s22 = sshll.u32 %s2283_s21, 4  ;;  %s26_s20 = int_to_ptr.vmem [resolvable:$true] %s25_s20  ;;  %s2386_s22 = int_to_ptr.vmem [resolvable:$true] %s49_s22 }
  0x27   :  { %s2158_s27 = scalar_lea.hbm %s2684_s0, 256 }
  0x28   :  { %p2159_p2 = scmp.ne.s32.totalorder %s2684_s0, %s2158_s27  ;;  %p2162_p3 = scmp.lt.u32.totalorder %s2158_s27, %s2684_s0 }
  0x2a   :  { %p2164_p4 = pnand %p2162_p3, %p2159_p2 }
  0x2c   :  { %2167 = shalt.err (!%p2164_p4)
}
  0x2d   :  { %s2168_s4 = scalar_lea.vmem %s26_s20, 256  ;;  %p2173_p6 = scmp.lt.s32.totalorder %s26_s20, %s26_s20 }
  0x2e   :  { %p2169_p5 = scmp.ne.s32.totalorder %s26_s20, %s2168_s4  ;;  %p2174_p7 = scmp.lt.s32.totalorder %s2168_s4, %s2168_s4 }
  0x30   :  { %p2175_p8 = por %p2174_p7, %p2173_p6 }
  0x32   :  { %p2176_p9 = pnand %p2175_p8, %p2169_p5 }
  0x34   :  { %2179 = shalt.err (!%p2176_p9)
}
  0x35   :  { %31 = dma.hbm_to_vmem [thread:$0]  %s2684_s0, 256, %s26_s20, [#allocation6], %s2280_s25, %s2280_s25, %s2281_s26  }
  0x36   :  { %s2180_s17 = scalar_lea.hbm %s2686_s2, 256 }
  0x37   :  { %p2181_p10 = scmp.ne.s32.totalorder %s2686_s2, %s2180_s17  ;;  %p2184_p11 = scmp.lt.u32.totalorder %s2180_s17, %s2686_s2 }
  0x39   :  { %p2186_p12 = pnand %p2184_p11, %p2181_p10 }
  0x3b   :  { %2189 = shalt.err (!%p2186_p12)
}
  0x3c   :  { %s2190_s21 = scalar_lea.vmem %s2386_s22, 256  ;;  %p2195_p0 = scmp.lt.s32.totalorder %s2386_s22, %s2386_s22 }
  0x3d   :  { %p2191_p13 = scmp.ne.s32.totalorder %s2386_s22, %s2190_s21  ;;  %p2196_p1 = scmp.lt.s32.totalorder %s2190_s21, %s2190_s21 }
  0x3f   :  { %p2197_p2 = por %p2196_p1, %p2195_p0 }
  0x41   :  { %p2198_p3 = pnand %p2197_p2, %p2191_p13 }
  0x43   :  { %2201 = shalt.err (!%p2198_p3)
}
  0x44   :  { %55 = dma.hbm_to_vmem [thread:$0]  %s2686_s2, 256, %s2386_s22, [#allocation9], %s2280_s25, %s2280_s25, %s2281_s26  }
  0x45   :  { %s2284_s23 = smov [#allocation13]   ;;  %s2285_s27 = smov [#allocation14]  }
  0x46   :  { %s77_s24 = sshll.u32 %s2284_s23, 4  ;;  %s91_s28 = sshll.u32 %s2285_s27, 4  ;;  %s78_s24 = int_to_ptr.vmem [resolvable:$true] %s77_s24  ;;  %s2423_s28 = int_to_ptr.vmem [resolvable:$true] %s91_s28 }
  0x47   :  { %s2202_s11 = scalar_lea.hbm %s2690_s6, 512 }
  0x48   :  { %p2203_p4 = scmp.ne.s32.totalorder %s2690_s6, %s2202_s11  ;;  %p2206_p5 = scmp.lt.u32.totalorder %s2202_s11, %s2690_s6 }
  0x4a   :  { %p2208_p6 = pnand %p2206_p5, %p2203_p4 }
  0x4c   :  { %2211 = shalt.err (!%p2208_p6)
}
  0x4d   :  { %s2212_s2 = scalar_lea.vmem %s78_s24, 512  ;;  %p2217_p8 = scmp.lt.s32.totalorder %s78_s24, %s78_s24 }
  0x4e   :  { %p2213_p7 = scmp.ne.s32.totalorder %s78_s24, %s2212_s2  ;;  %p2218_p9 = scmp.lt.s32.totalorder %s2212_s2, %s2212_s2 }
  0x50   :  { %p2219_p10 = por %p2218_p9, %p2217_p8 }
  0x52   :  { %p2220_p11 = pnand %p2219_p10, %p2213_p7 }
  0x54   :  { %2223 = shalt.err (!%p2220_p11)
}
  0x55   :  { %83 = dma.hbm_to_vmem [thread:$0]  %s2690_s6, 512, %s78_s24, [#allocation12], %s2280_s25, %s2280_s25, %s2281_s26  }
  0x56   :  { %s2224_s1 = scalar_lea.hbm %s2692_s8, 512 }
  0x57   :  { %p2225_p12 = scmp.ne.s32.totalorder %s2692_s8, %s2224_s1  ;;  %p2228_p13 = scmp.lt.u32.totalorder %s2224_s1, %s2692_s8 }
  0x59   :  { %p2230_p0 = pnand %p2228_p13, %p2225_p12 }
  0x5b   :  { %2233 = shalt.err (!%p2230_p0)
}
  0x5c   :  { %s2234_s20 = scalar_lea.vmem %s2423_s28, 512  ;;  %p2239_p2 = scmp.lt.s32.totalorder %s2423_s28, %s2423_s28 }
  0x5d   :  { %p2235_p1 = scmp.ne.s32.totalorder %s2423_s28, %s2234_s20  ;;  %p2240_p3 = scmp.lt.s32.totalorder %s2234_s20, %s2234_s20 }
  0x5f   :  { %p2241_p4 = por %p2240_p3, %p2239_p2 }
  0x61   :  { %p2242_p5 = pnand %p2241_p4, %p2235_p1 }
  0x63   :  { %2245 = shalt.err (!%p2242_p5)
}
  0x64   :  { %97 = dma.hbm_to_vmem [thread:$0]  %s2692_s8, 512, %s2423_s28, [#allocation15], %s2280_s25, %s2280_s25, %s2281_s26  }
  0x65   :  { %2268 = dma.done.wait [#allocation6], 256  }
  0x66   :  { %2269 = vsyncadd [#allocation6], 4294967040 }
  0x67   :  { %2270 = dma.done.wait [#allocation9], 512  }
  0x68   :  { %2271 = vsyncadd [#allocation9], 4294966784 }
  0x69   :  { %2272 = dma.done.wait [#allocation12], 1024  }
  0x6a   :  { %2273 = vsyncadd [#allocation12], 4294966272 }
  0x6b   :  { %2274 = dma.done.wait [#allocation15], 512  }
  0x6c   :  { %2275 = vsyncadd [#allocation15], 4294966784  ;;  %v219_v0 = vld [vmem:[#allocation13] sm:$0xff]  ;;  %v220_v1 = vld [vmem:[#allocation13 + $0x8] sm:$0xff]  ;;  %vm131_vm0 = vcmask 261120   ;;  %v2286_v16 = vmov 0.0  }
  0x6d   :  { %v120_v2 = vld [vmem:[#allocation11] sm:$0xff]  ;;  %v2050_v3 = vpack.c.bf16 %v220_v1, %v219_v0  ;;  %v121_v4 = vld [vmem:[#allocation11 + $0x8] sm:$0xff]  ;;  %v221_v5 = vld [vmem:[#allocation13 + $0x10] sm:$0xff]  ;;  %vm2287_vm1 = vmmov 0   ;;  %vm435_vm2 = vcmask 64512   ;;  %s2290_s16 = smov 104  }
  0x6e   :  { %v222_v6 = vld [vmem:[#allocation13 + $0x18] sm:$0xff]  ;;  %v2042_v7 = vpack.c.bf16 %v121_v4, %v120_v2  ;;  %v122_v9 = vld [vmem:[#allocation11 + $0x10] sm:$0xff]  ;;  %v217_v11 = vld [vmem:[#allocation8] sm:$0xff]  ;;  %s2291_s12 = smov 16   ;;  %s2292_s13 = smov 24   ;;  %vm1819_vm5 = vcmask 195584  }
  0x6f   :  { %v2054_v8 = vpack.c.bf16 %v222_v6, %v221_v5  ;;  %v123_v10 = vld [vmem:[#allocation11 + $0x18] sm:$0xff]  ;;  %2051 = vmatprep.subr.bf16.mxu1 %v2050_v3  ;;  %1948 = vmatprep.mubr.msk.f32.mxu1 %vm131_vm0, %v217_v11  ;;  %v118_v13 = vld [vmem:[#allocation5] sm:$0xff]  ;;  %v218_v14 = vld [vmem:[#allocation8 + $0x8] sm:$0xff]  ;;  %vm1816_vm6 = vcmask 130048   ;;  %s2293_s2 = smov [#allocation16]  }
  0x70   :  { %v2046_v12 = vpack.c.bf16 %v123_v10, %v122_v9  ;;  %2053 = vmatpush3.bf16.msra.mxu1 %v2050_v3  ;;  %2043 = vmatprep.subr.bf16.mxu0 %v2042_v7  ;;  %v119_v15 = vld [vmem:[#allocation5 + $0x8] sm:$0xff]  ;;  %v1847_v17 = vld [vmem:[%s2691_s7] ss:$0 sm:$0xff]  ;;  %v318_v36 = vld [vmem:[#allocation14 + $0x8] sm:$0xff]  ;;  %s1829_s22 = sshll.u32 %s2293_s2, 4  ;;  %s1830_s22 = int_to_ptr.vmem [resolvable:$true] %s1829_s22 }
  0x71   :  { %2045 = vmatpush3.bf16.msra.mxu0 %v2042_v7  ;;  %2055 = vmatprep.subr.bf16.mxu1 %v2054_v8  ;;  %v1844_v18 = vld [vmem:[%s2689_s5] ss:$0 sm:$0xff]  ;;  %s2288_s5 = smov 120   ;;  %v319_v37 = vld [vmem:[#allocation14 + $0x10] sm:$0xff]  ;;  %v320_v39 = vld [vmem:[#allocation14 + $0x18] sm:$0xff]  ;;  %s2246_s15 = scalar_lea.vmem %s1830_s22, 256 }
  0x72   :  { %2047 = vmatprep.subr.bf16.mxu0 %v2046_v12  ;;  %1937 = vmatprep.mubr.msk.f32.mxu0 %vm131_vm0, %v118_v13  ;;  %v317_v35 = vld [vmem:[#allocation14] sm:$0xff]  ;;  %v315_v40 = vld [vmem:[#allocation10] sm:$0xff]  ;;  %v2062_v41 = vpack.c.bf16 %v320_v39, %v319_v37  ;;  %v316_v42 = vld [vmem:[#allocation10 + $0x8] sm:$0xff]  ;;  %p2247_p6 = scmp.ne.s32.totalorder %s1830_s22, %s2246_s15  ;;  %p2251_p7 = scmp.lt.s32.totalorder %s1830_s22, %s1830_s22 }
  0x73   :  { %v2058_v38 = vpack.c.bf16 %v318_v36, %v317_v35  ;;  %v2511_v43 = vld [vmem:[%s2687_s3] ss:$0 sm:$0xff]  ;;  %v2517_v44 = vld [vmem:[%s2687_s3 + $0x1] ss:$0 sm:$0xff]  ;;  %p2252_p8 = scmp.lt.s32.totalorder %s2246_s15, %s2246_s15 }
  0x74   :  { %2057 = vmatpush3.bf16.msra.mxu1 %v2054_v8  ;;  %vm427_vm3 = vcmp.ge.f32.partialorder %v2511_v43, 0.5  ;;  %vm428_vm4 = vcmp.ge.f32.partialorder %v2517_v44, 0.5  ;;  %v1850_v53 = vld [vmem:[%s2693_s9] ss:$0 sm:$0xff]  ;;  %s2289_s9 = smov 112  }
  0x75   :  { %2049 = vmatpush3.bf16.msra.mxu0 %v2046_v12  ;;  %1962 = vmatprep.subr.mxu1 %v2286_v16  ;;  %p2253_p9 = por %p2252_p8, %p2251_p7 }
  0x76   :  { %2059 = vmatprep.subr.bf16.mxu0 %v2058_v38 }
  0x77   :  { %1949 = vmatmul.mubr.msk.f32.vlgmr.msra.gmra.mrb[0].mxu1 %vm131_vm0, %v218_v14  ;;  %p2254_p10 = pnand %p2253_p9, %p2247_p6 }
  0x78   :  { %1938 = vmatmul.mubr.msk.f32.vlgmr.msra.gmra.mrb[0].mxu0 %vm131_vm0, %v119_v15  ;;  %1964 = vmatprep.mubr.msk.f32.mxu1 %vm2287_vm1, %v2286_v16 }
  0x79   :  { %1959 = vmatprep.mubr.msk.f32.mxu0 %vm131_vm0, %v315_v40  ;;  %2061 = vmatpush3.bf16.msra.mxu0 %v2058_v38 }
  0x7a   :  { %2063 = vmatprep.subr.bf16.mxu0 %v2062_v41 }
  0x7d   :  { %2065 = vmatpush3.bf16.msra.mxu0 %v2062_v41 }
  0x7e   :  { %1972 = vmatprep.subr.mxu0 %v2286_v16 }
  0x80   :  { %1960 = vmatmul.mubr.msk.f32.vlgmr.msra.gmra.mrb[2].mxu0 %vm131_vm0, %v316_v42 }
  0x81   :  { %1974 = vmatprep.mubr.msk.f32.mxu0 %vm2287_vm1, %v2286_v16 }
 0x14a   :  { %v1950_v19 = vpop.f32.mrb[0].mxu1 }
 0x14b   :  { %v308_v20 = vadd.f32 %v1950_v19, %v1847_v17  ;;  %v302_v21 = vpop.f32.mrb[1].mxu1  ;;  %v1939_v22 = vpop.f32.mrb[0].mxu0 }
 0x14c   :  { %v303_v23 = vadd.f32 %v1847_v17, %v302_v21  ;;  %v210_v24 = vadd.f32 %v1939_v22, %v1844_v18  ;;  %v204_v25 = vpop.f32.mrb[1].mxu0 }
 0x14d   :  { %v312_v26 = vmax.f32 %v308_v20, 0.0  ;;  %v205_v27 = vadd.f32 %v1844_v18, %v204_v25 }
 0x14e   :  { %v311_v28 = vmax.f32 %v303_v23, 0.0  ;;  %v214_v29 = vmax.f32 %v210_v24, 0.0 }
 0x14f   :  { %314 = vst.msk [vmem:[#allocation3 + $0x8] sm:$0xff] %vm131_vm0, %v312_v26  ;;  %v213_v30 = vmax.f32 %v205_v27, 0.0 }
 0x150   :  { %313 = vst.msk [vmem:[#allocation3] sm:$0xff] %vm131_vm0, %v311_v28  ;;  %216 = vst.msk [vmem:[#allocation2 + $0x8] sm:$0xff] %vm131_vm0, %v214_v29 }
 0x151   :  { %215 = vst.msk [vmem:[#allocation2] sm:$0xff] %vm131_vm0, %v213_v30 }
 0x153   :  { %v1961_v54 = vpop.f32.mrb[2].mxu0 }
 0x154   :  { %v406_v55 = vadd.f32 %v1961_v54, %v1850_v53  ;;  %v400_v56 = vpop.f32.mrb[3].mxu0 }
 0x155   :  { %v401_v57 = vadd.f32 %v1850_v53, %v400_v56 }
 0x156   :  { %v2477_v31 = vld [vmem:[#allocation3 + $0x8] sm:$0xff]  ;;  %v410_v58 = vmax.f32 %v406_v55, 0.0 }
 0x157   :  { %848 = vrot.lane.b32.xlu1 %v2477_v31, %s2288_s5  ;;  %v2481_v32 = vld [vmem:[#allocation3] sm:$0xff]  ;;  %v2497_v34 = vld [vmem:[#allocation2 + $0x8] sm:$0xff]  ;;  %v409_v59 = vmax.f32 %v401_v57, 0.0 }
 0x158   :  { %1963 = vmatpush3.xpose.msk.msra.mxu1 %vm435_vm2, %v2481_v32  ;;  %v2485_v33 = vld [vmem:[#allocation2] sm:$0xff]  ;;  %412 = vst.msk [vmem:[#allocation4 + $0x8] sm:$0xff] %vm131_vm0, %v410_v58 }
 0x159   :  { %1967 = vmatprep.subr.mxu1 %v2286_v16  ;;  %411 = vst.msk [vmem:[#allocation4] sm:$0xff] %vm131_vm0, %v409_v59 }
 0x15b   :  { %765 = vrot.lane.b32.xlu1 %v2485_v33, %s2288_s5  ;;  %1965 = vmatmul.mubr.msk.f32.vlgmr.msra.gmra.mrb[2].mxu1 %vm435_vm2, %v2485_v33 }
 0x15c   :  { %1968 = vmatpush3.xpose.msk.msra.mxu1 %vm435_vm2, %v2477_v31  ;;  %1969 = vmatprep.mubr.msk.f32.mxu1 %vm2287_vm1, %v2286_v16 }
 0x15d   :  { %1977 = vmatprep.subr.mxu1 %v2286_v16 }
 0x15f   :  { %1970 = vmatmul.mubr.msk.f32.vlgmr.msra.gmra.mrb[4].mxu1 %vm435_vm2, %v2497_v34  ;;  %v2537_v7 = vld [vmem:[#allocation4 + $0x8] sm:$0xff] }
 0x160   :  { %1979 = vmatprep.mubr.msk.f32.mxu1 %vm2287_vm1, %v2286_v16  ;;  %v2535_v6 = vld [vmem:[#allocation4] sm:$0xff]  ;;  %1978 = vmatpush3.msra.mxu1 %v2537_v7 }
 0x161   :  { %1973 = vmatpush3.msra.mxu0 %v2535_v6  ;;  %1987 = vmatprep.subr.mxu1 %v2286_v16 }
 0x162   :  { %1982 = vmatprep.subr.mxu0 %v2286_v16 }
 0x1c9   :  { %v849_v8 = vpop.permute.xlu1 %848 }
 0x1cd   :  { %v766_v9 = vpop.permute.xlu1 %765 }
 0x22e   :  { %v508_v45 = vpop.f32.mrb[2].mxu1 }
 0x22f   :  { %v588_v46 = vsel %vm427_vm3, %v508_v45, -1e+09  ;;  %v1966_v47 = vpop.f32.mrb[3].mxu1 }
 0x230   :  { %v590_v48 = vsel %vm435_vm2, %v588_v46, -inf }
 0x231   :  { %591 = vmax.xlane.f32.xlu0 %v590_v48 }
 0x232   :  { %v584_v49 = vpop.f32.mrb[4].mxu1 }
 0x233   :  { %v589_v50 = vsel %vm428_vm4, %v584_v49, -1e+09  ;;  %v1971_v51 = vpop.f32.mrb[5].mxu1 }
 0x234   :  { %v593_v52 = vsel %vm435_vm2, %v589_v50, -inf }
 0x235   :  { %594 = vmax.xlane.f32.xlu0 %v593_v52 }
 0x24b   :  { %768 = vrot.lane.b32.xlu0 %v2481_v32, %s2288_s5 }
 0x2be   :  { %v592_v60 = vpop.xlane.xlu0 %591 }
 0x2bf   :  { %v596_v61 = vsub.f32 %v588_v46, %v592_v60 }
 0x2c1   :  { %v598_v62 = vmul.f32 1.442695, %v596_v61 }
 0x2c2   :  { %v595_v63 = vpop.xlane.xlu0 %594 }
 0x2c3   :  { %2082 = vpow2.f32 %v598_v62  ;;  %v597_v0 = vsub.f32 %v589_v50, %v595_v63 }
 0x2c5   :  { %v600_v1 = vmul.f32 1.442695, %v597_v0 }
 0x2c6   :  { %v769_v14 = vpop.permute.xlu0 %768 }
 0x2c7   :  { %2084 = vpow2.f32 %v600_v1 }
 0x2cd   :  { %v2083_v2 = vpop.eup %2082 }
 0x2ce   :  { %v602_v3 = vsel %vm435_vm2, %v2083_v2, 0.0 }
 0x2cf   :  { %603 = vadd.xlane.f32.xlu1 %v602_v3 }
 0x2d1   :  { %v2085_v4 = vpop.eup %2084 }
 0x2d2   :  { %v605_v5 = vsel %vm435_vm2, %v2085_v4, 0.0 }
 0x2d3   :  { %606 = vadd.xlane.f32.xlu1 %v605_v5 }
 0x2e4   :  { %845 = vrot.lane.b32.xlu1 %v2497_v34, %s2288_s5 }
 0x35c   :  { %v604_v10 = vpop.xlane.xlu1 %603 }
 0x35d   :  { %2086 = vrcp.f32 %v604_v10 }
 0x360   :  { %v607_v11 = vpop.xlane.xlu1 %606 }
 0x361   :  { %2088 = vrcp.f32 %v607_v11 }
 0x364   :  { %v846_v18 = vpop.permute.xlu1 %845 }
 0x367   :  { %v2087_v12 = vpop.eup %2086 }
 0x368   :  { %v610_v13 = vmul.f32 %v2087_v12, %v2083_v2 }
 0x36a   :  { %1975 = vmatmul.mubr.msk.f32.vlgmr.msra.gmra.mrb[4].mxu0 %vm435_vm2, %v610_v13 }
 0x36b   :  { %v2089_v15 = vpop.eup %2088  ;;  %1983 = vmatpush3.xpose.msk.msra.mxu0 %vm435_vm2, %v769_v14  ;;  %1984 = vmatprep.mubr.msk.f32.mxu0 %vm2287_vm1, %v2286_v16 }
 0x36c   :  { %v611_v17 = vmul.f32 %v2089_v15, %v2085_v4  ;;  %1992 = vmatprep.subr.mxu0 %v2286_v16 }
 0x36e   :  { %1980 = vmatmul.mubr.msk.f32.vlgmr.msra.gmra.mrb[6].mxu1 %vm435_vm2, %v611_v17  ;;  %1985 = vmatmul.mubr.msk.f32.vlgmr.msra.gmra.mrb[6].mxu0 %vm435_vm2, %v766_v9 }
 0x36f   :  { %1988 = vmatpush3.xpose.msk.msra.mxu1 %vm435_vm2, %v849_v8  ;;  %1989 = vmatprep.mubr.msk.f32.mxu1 %vm2287_vm1, %v2286_v16 }
 0x370   :  { %1997 = vmatprep.subr.mxu1 %v2286_v16  ;;  %1994 = vmatprep.mubr.msk.f32.mxu0 %vm2287_vm1, %v2286_v16 }
 0x372   :  { %1990 = vmatmul.mubr.msk.f32.vlgmr.msra.gmra.mrb[8].mxu1 %vm435_vm2, %v846_v18 }
 0x373   :  { %1999 = vmatprep.mubr.msk.f32.mxu1 %vm2287_vm1, %v2286_v16 }
 0x43d   :  { %v2561_v19 = vpop.f32.mrb[4].mxu0 }
 0x43e   :  { %v1976_v20 = vpop.f32.mrb[5].mxu0 }
 0x441   :  { %v2563_v21 = vpop.f32.mrb[6].mxu1  ;;  %v840_v22 = vpop.f32.mrb[6].mxu0 }
 0x442   :  { %v924_v23 = vsel %vm427_vm3, %v840_v22, -1e+09  ;;  %v1981_v24 = vpop.f32.mrb[7].mxu1  ;;  %v1986_v25 = vpop.f32.mrb[7].mxu0 }
 0x443   :  { %v926_v26 = vsel %vm435_vm2, %v924_v23, -inf }
 0x444   :  { %927 = vmax.xlane.f32.xlu0 %v926_v26 }
 0x445   :  { %v920_v27 = vpop.f32.mrb[8].mxu1 }
 0x446   :  { %v925_v28 = vsel %vm428_vm4, %v920_v27, -1e+09  ;;  %v1991_v29 = vpop.f32.mrb[9].mxu1 }
 0x447   :  { %v929_v30 = vsel %vm435_vm2, %v925_v28, -inf }
 0x448   :  { %930 = vmax.xlane.f32.xlu1 %v929_v30 }
 0x459   :  { %1026 = vrot.lane.b32.xlu1 %v2537_v7, %s2288_s5 }
 0x45a   :  { %949 = vrot.lane.b32.xlu0 %v2535_v6, %s2288_s5 }
 0x45d   :  { %1112 = vrot.lane.b32.xlu1 %v2481_v32, %s2289_s9 }
 0x461   :  { %1192 = vrot.lane.b32.xlu1 %v2477_v31, %s2289_s9 }
 0x465   :  { %1189 = vrot.lane.b32.xlu1 %v2497_v34, %s2289_s9 }
 0x4d1   :  { %v928_v35 = vpop.xlane.xlu0 %927 }
 0x4d2   :  { %v932_v36 = vsub.f32 %v924_v23, %v928_v35 }
 0x4d4   :  { %v934_v37 = vmul.f32 1.442695, %v932_v36 }
 0x4d5   :  { %v950_v38 = vpop.permute.xlu0 %949  ;;  %v931_v39 = vpop.xlane.xlu1 %930 }
 0x4d6   :  { %2090 = vpow2.f32 %v934_v37  ;;  %v933_v40 = vsub.f32 %v925_v28, %v931_v39  ;;  %1993 = vmatpush3.msra.mxu0 %v950_v38 }
 0x4d7   :  { %2002 = vmatprep.subr.mxu0 %v2286_v16 }
 0x4d8   :  { %v936_v41 = vmul.f32 1.442695, %v933_v40 }
 0x4d9   :  { %v1027_v42 = vpop.permute.xlu1 %1026 }
 0x4da   :  { %2092 = vpow2.f32 %v936_v41  ;;  %1998 = vmatpush3.msra.mxu1 %v1027_v42 }
 0x4db   :  { %2007 = vmatprep.subr.mxu1 %v2286_v16 }
 0x4dd   :  { %v1113_v51 = vpop.permute.xlu1 %1112 }
 0x4e0   :  { %v2091_v45 = vpop.eup %2090 }
 0x4e1   :  { %v938_v46 = vsel %vm435_vm2, %v2091_v45, 0.0  ;;  %v1193_v55 = vpop.permute.xlu1 %1192 }
 0x4e2   :  { %939 = vadd.xlane.f32.xlu0 %v938_v46 }
 0x4e4   :  { %v2093_v47 = vpop.eup %2092 }
 0x4e5   :  { %v941_v48 = vsel %vm435_vm2, %v2093_v47, 0.0  ;;  %v1190_v58 = vpop.permute.xlu1 %1189 }
 0x4e6   :  { %942 = vadd.xlane.f32.xlu0 %v941_v48 }
 0x4fc   :  { %1109 = vrot.lane.b32.xlu0 %v2485_v33, %s2289_s9 }
 0x56f   :  { %v940_v49 = vpop.xlane.xlu0 %939 }
 0x570   :  { %2094 = vrcp.f32 %v940_v49 }
 0x573   :  { %v943_v50 = vpop.xlane.xlu0 %942 }
 0x574   :  { %2096 = vrcp.f32 %v943_v50 }
 0x577   :  { %v1110_v57 = vpop.permute.xlu0 %1109 }
 0x57a   :  { %v2095_v52 = vpop.eup %2094 }
 0x57b   :  { %v946_v53 = vmul.f32 %v2095_v52, %v2091_v45 }
 0x57d   :  { %1995 = vmatmul.mubr.msk.f32.vlgmr.msra.gmra.mrb[8].mxu0 %vm435_vm2, %v946_v53 }
 0x57e   :  { %v2097_v54 = vpop.eup %2096  ;;  %2003 = vmatpush3.xpose.msk.msra.mxu0 %vm435_vm2, %v1113_v51  ;;  %2004 = vmatprep.mubr.msk.f32.mxu0 %vm2287_vm1, %v2286_v16 }
 0x57f   :  { %v947_v56 = vmul.f32 %v2097_v54, %v2093_v47  ;;  %2012 = vmatprep.subr.mxu0 %v2286_v16 }
 0x581   :  { %2000 = vmatmul.mubr.msk.f32.vlgmr.msra.gmra.mrb[10].mxu1 %vm435_vm2, %v947_v56  ;;  %2005 = vmatmul.mubr.msk.f32.vlgmr.msra.gmra.mrb[10].mxu0 %vm435_vm2, %v1110_v57 }
 0x582   :  { %2008 = vmatpush3.xpose.msk.msra.mxu1 %vm435_vm2, %v1193_v55  ;;  %2009 = vmatprep.mubr.msk.f32.mxu1 %vm2287_vm1, %v2286_v16 }
 0x583   :  { %2017 = vmatprep.subr.mxu1 %v2286_v16  ;;  %2014 = vmatprep.mubr.msk.f32.mxu0 %vm2287_vm1, %v2286_v16 }
 0x585   :  { %2010 = vmatmul.mubr.msk.f32.vlgmr.msra.gmra.mrb[12].mxu1 %vm435_vm2, %v1190_v58 }
 0x586   :  { %2019 = vmatprep.mubr.msk.f32.mxu1 %vm2287_vm1, %v2286_v16 }
 0x650   :  { %v2603_v59 = vpop.f32.mrb[8].mxu0 }
 0x651   :  { %v1996_v60 = vpop.f32.mrb[9].mxu0 }
 0x654   :  { %v2605_v61 = vpop.f32.mrb[10].mxu1  ;;  %v1184_v62 = vpop.f32.mrb[10].mxu0 }
 0x655   :  { %v1268_v63 = vsel %vm427_vm3, %v1184_v62, -1e+09  ;;  %v2001_v0 = vpop.f32.mrb[11].mxu1  ;;  %v2006_v1 = vpop.f32.mrb[11].mxu0 }
 0x656   :  { %v1270_v2 = vsel %vm435_vm2, %v1268_v63, -inf }
 0x657   :  { %1271 = vmax.xlane.f32.xlu0 %v1270_v2 }
 0x658   :  { %v1264_v3 = vpop.f32.mrb[12].mxu1 }
 0x659   :  { %v1269_v4 = vsel %vm428_vm4, %v1264_v3, -1e+09  ;;  %v2011_v5 = vpop.f32.mrb[13].mxu1 }
 0x65a   :  { %v1273_v8 = vsel %vm435_vm2, %v1269_v4, -inf }
 0x65b   :  { %1274 = vmax.xlane.f32.xlu1 %v1273_v8 }
 0x66c   :  { %1370 = vrot.lane.b32.xlu1 %v2537_v7, %s2289_s9 }
 0x66d   :  { %1293 = vrot.lane.b32.xlu0 %v2535_v6, %s2289_s9 }
 0x670   :  { %1456 = vrot.lane.b32.xlu1 %v2481_v32, %s2290_s16 }
 0x674   :  { %1536 = vrot.lane.b32.xlu1 %v2477_v31, %s2290_s16 }
 0x678   :  { %1533 = vrot.lane.b32.xlu1 %v2497_v34, %s2290_s16 }
 0x6e4   :  { %v1272_v9 = vpop.xlane.xlu0 %1271 }
 0x6e5   :  { %v1276_v10 = vsub.f32 %v1268_v63, %v1272_v9 }
 0x6e7   :  { %v1278_v11 = vmul.f32 1.442695, %v1276_v10 }
 0x6e8   :  { %v1294_v12 = vpop.permute.xlu0 %1293  ;;  %v1275_v13 = vpop.xlane.xlu1 %1274 }
 0x6e9   :  { %2098 = vpow2.f32 %v1278_v11  ;;  %v1277_v14 = vsub.f32 %v1269_v4, %v1275_v13  ;;  %2013 = vmatpush3.msra.mxu0 %v1294_v12 }
 0x6ea   :  { %2022 = vmatprep.subr.mxu0 %v2286_v16 }
 0x6eb   :  { %v1280_v15 = vmul.f32 1.442695, %v1277_v14 }
 0x6ec   :  { %v1371_v17 = vpop.permute.xlu1 %1370 }
 0x6ed   :  { %2100 = vpow2.f32 %v1280_v15  ;;  %2018 = vmatpush3.msra.mxu1 %v1371_v17 }
 0x6ee   :  { %2027 = vmatprep.subr.mxu1 %v2286_v16 }
 0x6f0   :  { %v1457_v23 = vpop.permute.xlu1 %1456 }
 0x6f3   :  { %v2099_v31 = vpop.eup %2098 }
 0x6f4   :  { %v1282_v32 = vsel %vm435_vm2, %v2099_v31, 0.0  ;;  %v1537_v27 = vpop.permute.xlu1 %1536 }
 0x6f5   :  { %1283 = vadd.xlane.f32.xlu0 %v1282_v32 }
 0x6f7   :  { %v2101_v34 = vpop.eup %2100 }
 0x6f8   :  { %v1285_v18 = vsel %vm435_vm2, %v2101_v34, 0.0  ;;  %v1534_v29 = vpop.permute.xlu1 %1533 }
 0x6f9   :  { %1286 = vadd.xlane.f32.xlu0 %v1285_v18 }
 0x70f   :  { %1453 = vrot.lane.b32.xlu0 %v2485_v33, %s2290_s16 }
 0x782   :  { %v1284_v20 = vpop.xlane.xlu0 %1283 }
 0x783   :  { %2102 = vrcp.f32 %v1284_v20 }
 0x786   :  { %v1287_v22 = vpop.xlane.xlu0 %1286 }
 0x787   :  { %2104 = vrcp.f32 %v1287_v22 }
 0x78a   :  { %v1454_v33 = vpop.permute.xlu0 %1453 }
 0x78d   :  { %v2103_v24 = vpop.eup %2102 }
 0x78e   :  { %v1290_v25 = vmul.f32 %v2103_v24, %v2099_v31 }
 0x790   :  { %2015 = vmatmul.mubr.msk.f32.vlgmr.msra.gmra.mrb[12].mxu0 %vm435_vm2, %v1290_v25 }
 0x791   :  { %v2105_v26 = vpop.eup %2104  ;;  %2023 = vmatpush3.xpose.msk.msra.mxu0 %vm435_vm2, %v1457_v23  ;;  %2024 = vmatprep.mubr.msk.f32.mxu0 %vm2287_vm1, %v2286_v16 }
 0x792   :  { %v1291_v28 = vmul.f32 %v2105_v26, %v2101_v34  ;;  %2032 = vmatprep.subr.mxu0 %v2286_v16 }
 0x794   :  { %2020 = vmatmul.mubr.msk.f32.vlgmr.msra.gmra.mrb[14].mxu1 %vm435_vm2, %v1291_v28  ;;  %2025 = vmatmul.mubr.msk.f32.vlgmr.msra.gmra.mrb[14].mxu0 %vm435_vm2, %v1454_v33 }
 0x795   :  { %2028 = vmatpush3.xpose.msk.msra.mxu1 %vm435_vm2, %v1537_v27  ;;  %2029 = vmatprep.mubr.msk.f32.mxu1 %vm2287_vm1, %v2286_v16 }
 0x796   :  { %2037 = vmatprep.subr.mxu1 %v2286_v16  ;;  %2034 = vmatprep.mubr.msk.f32.mxu0 %vm2287_vm1, %v2286_v16 }
 0x798   :  { %2030 = vmatmul.mubr.msk.f32.vlgmr.msra.gmra.mrb[16].mxu1 %vm435_vm2, %v1534_v29 }
 0x799   :  { %2039 = vmatprep.mubr.msk.f32.mxu1 %vm2287_vm1, %v2286_v16 }
 0x863   :  { %v1365_v30 = vpop.f32.mrb[12].mxu0 }
 0x864   :  { %v2016_v35 = vpop.f32.mrb[13].mxu0 }
 0x867   :  { %v1442_v36 = vpop.f32.mrb[14].mxu1  ;;  %v1528_v37 = vpop.f32.mrb[14].mxu0 }
 0x868   :  { %v1612_v38 = vsel %vm427_vm3, %v1528_v37, -1e+09  ;;  %v2021_v39 = vpop.f32.mrb[15].mxu1  ;;  %v2026_v40 = vpop.f32.mrb[15].mxu0 }
 0x869   :  { %v1614_v41 = vsel %vm435_vm2, %v1612_v38, -inf }
 0x86a   :  { %1615 = vmax.xlane.f32.xlu0 %v1614_v41 }
 0x86b   :  { %v1608_v42 = vpop.f32.mrb[16].mxu1 }
 0x86c   :  { %v1613_v45 = vsel %vm428_vm4, %v1608_v42, -1e+09  ;;  %v2031_v46 = vpop.f32.mrb[17].mxu1 }
 0x86d   :  { %v1617_v47 = vsel %vm435_vm2, %v1613_v45, -inf }
 0x86e   :  { %1618 = vmax.xlane.f32.xlu1 %v1617_v47 }
 0x87f   :  { %1714 = vrot.lane.b32.xlu1 %v2537_v7, %s2290_s16 }
 0x883   :  { %1792 = vrot.lane.b32.xlu1 %v2603_v59, %s2281_s26 }
 0x887   :  { %1794 = vrot.lane.b32.xlu1 %v2605_v61, %s2281_s26 }
 0x88b   :  { %1802 = vrot.lane.b32.xlu1 %v1442_v36, %s2291_s12 }
 0x8f7   :  { %v1616_v16 = vpop.xlane.xlu0 %1615 }
 0x8f8   :  { %v1620_v43 = vsub.f32 %v1612_v38, %v1616_v16 }
 0x8fa   :  { %v1622_v48 = vmul.f32 1.442695, %v1620_v43 }
 0x8fb   :  { %v1619_v44 = vpop.xlane.xlu1 %1618 }
 0x8fc   :  { %2106 = vpow2.f32 %v1622_v48  ;;  %v1621_v49 = vsub.f32 %v1613_v45, %v1619_v44 }
 0x8fe   :  { %v1624_v50 = vmul.f32 1.442695, %v1621_v49 }
 0x8ff   :  { %v1715_v51 = vpop.permute.xlu1 %1714 }
 0x900   :  { %2108 = vpow2.f32 %v1624_v50  ;;  %2038 = vmatpush3.msra.mxu1 %v1715_v51 }
 0x903   :  { %v1793_v1 = vpop.permute.xlu1 %1792 }
 0x904   :  { %v1814_v4 = vsel %vm435_vm2, %v2561_v19, %v1793_v1 }
 0x906   :  { %v2107_v52 = vpop.eup %2106 }
 0x907   :  { %v1626_v7 = vsel %vm435_vm2, %v2107_v52, 0.0  ;;  %v1795_v2 = vpop.permute.xlu1 %1794 }
 0x908   :  { %1627 = vadd.xlane.f32.xlu0 %v1626_v7  ;;  %v1815_v11 = vsel %vm435_vm2, %v2563_v21, %v1795_v2 }
 0x90a   :  { %v2109_v53 = vpop.eup %2108 }
 0x90b   :  { %v1629_v54 = vsel %vm435_vm2, %v2109_v53, 0.0  ;;  %v1803_v5 = vpop.permute.xlu1 %1802 }
 0x90c   :  { %1630 = vadd.xlane.f32.xlu0 %v1629_v54  ;;  %v1818_v12 = vsel %vm1816_vm6, %v1815_v11, %v1803_v5 }
 0x922   :  { %1637 = vrot.lane.b32.xlu0 %v2535_v6, %s2290_s16 }
 0x926   :  { %1800 = vrot.lane.b32.xlu0 %v1365_v30, %s2291_s12 }
 0x995   :  { %v1628_v55 = vpop.xlane.xlu0 %1627 }
 0x996   :  { %2110 = vrcp.f32 %v1628_v55 }
 0x999   :  { %v1631_v56 = vpop.xlane.xlu0 %1630 }
 0x99a   :  { %2112 = vrcp.f32 %v1631_v56 }
 0x99d   :  { %v1638_v57 = vpop.permute.xlu0 %1637 }
 0x99e   :  { %2033 = vmatpush3.msra.mxu0 %v1638_v57 }
 0x9a0   :  { %v2111_v58 = vpop.eup %2110 }
 0x9a1   :  { %v1634_v59 = vmul.f32 %v2111_v58, %v2107_v52  ;;  %v1801_v3 = vpop.permute.xlu0 %1800 }
 0x9a2   :  { %v1817_v8 = vsel %vm1816_vm6, %v1814_v4, %v1801_v3 }
 0x9a3   :  { %2035 = vmatmul.mubr.msk.f32.vlgmr.msra.gmra.mrb[16].mxu0 %vm435_vm2, %v1634_v59 }
 0x9a4   :  { %v2113_v60 = vpop.eup %2112 }
 0x9a5   :  { %v1635_v61 = vmul.f32 %v2113_v60, %v2109_v53 }
 0x9a7   :  { %2040 = vmatmul.mubr.msk.f32.vlgmr.msra.gmra.mrb[18].mxu1 %vm435_vm2, %v1635_v61 }
 0xa76   :  { %v1709_v62 = vpop.f32.mrb[16].mxu0 }
 0xa77   :  { %1808 = vrot.lane.b32.xlu0 %v1709_v62, %s2292_s13  ;;  %v2036_v63 = vpop.f32.mrb[17].mxu0 }
 0xa7a   :  { %v1786_v6 = vpop.f32.mrb[18].mxu1 }
 0xa7b   :  { %1810 = vrot.lane.b32.xlu1 %v1786_v6, %s2292_s13  ;;  %v2041_v0 = vpop.f32.mrb[19].mxu1 }
 0xae9   :  { %v1809_v9 = vpop.permute.xlu0 %1808 }
 0xaea   :  { %v1820_v10 = vsel %vm1819_vm5, %v1817_v8, %v1809_v9 }
 0xaeb   :  { %1822 = vst.msk [vmem:[#allocation16] sm:$0xff] %vm131_vm0, %v1820_v10 }
 0xaed   :  { %v1811_v13 = vpop.permute.xlu1 %1810 }
 0xaee   :  { %v1821_v14 = vsel %vm1819_vm5, %v1818_v12, %v1811_v13 }
 0xaef   :  { %1823 = vst.msk [vmem:[#allocation16 + $0x8] sm:$0xff] %vm131_vm0, %v1821_v14 }
 0xaf0   :  { %2257 = shalt.err (!%p2254_p10)
}
 0xaf1   :  { %s2258_s1 = scalar_lea.hbm %s2694_s10, 256 }
 0xaf2   :  { %p2259_p11 = scmp.ne.s32.totalorder %s2694_s10, %s2258_s1  ;;  %p2262_p12 = scmp.lt.u32.totalorder %s2258_s1, %s2694_s10 }
 0xaf4   :  { %p2264_p13 = pnand %p2262_p12, %p2259_p11 }
 0xaf6   :  { %2267 = shalt.err (!%p2264_p13)
}
 0xaf7   :  { %1835 = dma.vmem_to_hbm [thread:$0]  %s1830_s22, 256, %s2694_s10, [#allocation7], %s2280_s25, %s2280_s25, %s2281_s26  }
 0xaf8   :  { %2276 = dma.done.wait [#allocation7], 256  }
 0xaf9   :  { %2277 = vsyncadd [#allocation7], 4294967040 }
 0xafa   :  { %1839 = vsyncpa [#allocation6], 1 }
 0xafb   :  { %1840 = vsyncpa [#allocation9], 1 }
 0xafc   :  { %1841 = vsyncpa [#allocation12], 1 }
 0xafd   :  { %1842 = vsyncpa [#allocation15], 1 }
 0xafe   :  { %1843 = vsyncpa [#allocation7], 1 }

</bundles_post_ra>
